<compile_context>
chip_gen: v5e
topology: v5e:2x2
jax: 0.10.0
libtpu: 0.0.40
codegen_flags: <defaults>
</compile_context>

<pallas_src>
import math

import jax
import jax.numpy as jnp
from jax.experimental import pallas as pl
from jax.experimental.pallas import tpu as pltpu


def _copy_kernel(x_ref, o_ref):
    # Identity copy of the current tile; the reshape itself happens outside.
    o_ref[...] = x_ref[...]


_LANE = 128
_SUBLANE = 8
_MAX_LANES = 4096              # widest lane-dense slab per row
_TARGET_BLOCK_BYTES = 1 << 20  # ~1 MiB/tile; x4 (in/out, double-buffered) << VMEM


def _pick_lanes(total, tail_shape):
    """Widest multiple-of-128 divisor of `total` (capped); else full last dim."""
    if total % _LANE == 0:
        for k in range(_MAX_LANES // _LANE, 0, -1):
            lanes = k * _LANE
            if total % lanes == 0:
                return lanes
    if tail_shape:
        return tail_shape[-1]
    return total


def _pick_block_rows(rows, lanes, itemsize):
    """Largest multiple-of-8 divisor of `rows` whose tile is ~<= 1 MiB."""
    if rows % _SUBLANE != 0:
        return rows  # full-array block: always legal w.r.t. the (8,128) rule
    max_rows = (_TARGET_BLOCK_BYTES // (lanes * itemsize)) // _SUBLANE * _SUBLANE
    block_rows = min(rows, max(_SUBLANE, max_rows))
    while rows % block_rows != 0:
        block_rows -= _SUBLANE
    return block_rows


def reshaper(x, shape):
    """Pallas equivalent of Reshaper(*shape).forward(x) == x.view(-1, *shape)."""
    shape = tuple(int(s) for s in shape)
    total = math.prod(x.shape) if x.shape else 1
    tail = math.prod(shape) if shape else 1
    assert tail > 0 and total % tail == 0, (
        "total elements must be divisible by prod(shape)")
    lead = total // tail
    out_full = (lead,) + shape

    # --- lane-dense 2-D copy layout (row-major order preserved) --------------
    lanes = _pick_lanes(total, shape)
    rows = total // lanes
    x2 = x.reshape(rows, lanes)          # metadata-only reshape in XLA

    itemsize = jnp.dtype(x.dtype).itemsize
    block_rows = _pick_block_rows(rows, lanes, itemsize)
    grid = (rows // block_rows,)

    y2 = pl.pallas_call(
        _copy_kernel,
        out_shape=jax.ShapeDtypeStruct((rows, lanes), x.dtype),
        grid=grid,
        in_specs=[pl.BlockSpec((block_rows, lanes), lambda i: (i, 0))],
        out_specs=pl.BlockSpec((block_rows, lanes), lambda i: (i, 0)),
        compiler_params=pltpu.CompilerParams(
            dimension_semantics=("parallel",)),
    )(x2)

    return y2.reshape(out_full)          # metadata-only reshape in XLA


if __name__ == "__main__":
    key = jax.random.PRNGKey(0)
    x = jax.random.normal(key, (2, 4, 16, 16), jnp.float32)

    # Case 1: Reshaper(1024) -> flatten features: (2, 4, 16, 16) -> (2, 1024)
    out1 = reshaper(x, (4 * 16 * 16,))
    # Case 2: Reshaper(4, 256) -> (2, 4, 256)
    out2 = reshaper(x, (4, 256))
    # Case 3: odd tail (not a multiple of 128) exercises the fallback path.
    out3 = reshaper(x, (16, 16))         # -> (8, 16, 16)
    jax.block_until_ready((out1, out2, out3))

    # Reference: plain row-major reshape (== torch .view on contiguous input).
    ref1 = x.reshape(-1, 4 * 16 * 16)
    ref2 = x.reshape(-1, 4, 256)
    ref3 = x.reshape(-1, 16, 16)
    assert out1.shape == (2, 1024) and out2.shape == (2, 4, 256)
    assert out3.shape == (8, 16, 16)
    assert jnp.array_equal(out1, ref1)
    assert jnp.array_equal(out2, ref2)
    assert jnp.array_equal(out3, ref3)

    print("KERNEL_OK")
</pallas_src>

<mosaic_0001>
module attributes {stable_mosaic.version = 11 : i64} {
  func.func @_copy_kernel(%arg0: i32, %arg1: memref<1x2048xf32, #tpu.memory_space<vmem>>, %arg2: memref<1x2048xf32, #tpu.memory_space<vmem>>) attributes {dimension_semantics = [#tpu.dimension_semantics<parallel>], iteration_bounds = array<i64: 1>, scalar_prefetch = 0 : i64, scratch_operands = 0 : i64, tpu.core_type = #tpu.core_type<tc>, window_params = [{transform_indices = @transform_0, window_bounds = array<i64: 1, 2048>}, {transform_indices = @transform_1, window_bounds = array<i64: 1, 2048>}]} {
    %c0 = arith.constant 0 : index
    %c0_0 = arith.constant 0 : index
    %0 = vector.load %arg1[%c0, %c0_0] : memref<1x2048xf32, #tpu.memory_space<vmem>>, vector<1x2048xf32>
    %c0_1 = arith.constant 0 : index
    %c0_2 = arith.constant 0 : index
    %1 = vector.load %arg2[%c0_1, %c0_2] : memref<1x2048xf32, #tpu.memory_space<vmem>>, vector<1x2048xf32>
    tpu.vector_store %arg2[%c0_1, %c0_2], %0 {strides = array<i32>} : memref<1x2048xf32, #tpu.memory_space<vmem>>, vector<1x2048xf32>,
    return
  }
  func.func @transform_0(%arg0: i32) -> (i32, i32) {
    %c0_i32 = arith.constant 0 : i32
    %c0_i32_0 = arith.constant 0 : i32
    return %arg0, %c0_i32 : i32, i32
  }
  func.func @transform_1(%arg0: i32) -> (i32, i32) {
    %c0_i32 = arith.constant 0 : i32
    %c0_i32_0 = arith.constant 0 : i32
    return %arg0, %c0_i32 : i32, i32
  }
}

</mosaic_0001>

<bundles_post_ra>
// kernel: tpu_custom_call.1
= control target key start
LH: loop header
LB: loop body
LE: loop exit
PB: predicated region body
PF: predicated region fallthrough
CT: control target
= control target key end

     0   :  { %6 = vsyncpa [#allocation3], 0  ;;  %s116_s0 = inlined_call_operand.hbm [shape: f32[1,2048], index: 0, kind: input, shape index: {}]   ;;  %s117_s1 = inlined_call_operand.hbm [shape: f32[1,2048], index: 1, kind: output, shape index: {}]  }
   0x1   :  { %7 = vsyncpa [#allocation4], 0  ;;  %s13_s8 = sshll.u32 %s116_s0, 4  ;;  %s98_s9 = smov [#allocation2]   ;;  %s14_s8 = int_to_ptr.hbm [resolvable:$true] %s13_s8 }
   0x2   :  { %s15_s10 = sshll.u32 %s98_s9, 4  ;;  %s16_s10 = int_to_ptr.vmem [resolvable:$true] %s15_s10 }
   0x3   :  { %18 = dma.hbm_to_vmem [thread:$0]  %s14_s8, 256, %s16_s10, [#allocation3]  }
   0x4   :  { %94 = dma.done.wait [#allocation3], 256  }
   0x5   :  { %95 = vsyncadd [#allocation3], 4294967040  ;;  %s99_s11 = smov [#allocation5]   ;;  %s34_s15 = sshll.u32 %s117_s1, 4  ;;  %v23_v0 = vld [vmem:[#allocation2] sm:$0xff]  ;;  %v24_v1 = vld [vmem:[#allocation2 + $0x8] sm:$0xff]  ;;  %s35_s15 = int_to_ptr.hbm [resolvable:$true] %s34_s15 }
   0x6   :  { %s32_s12 = sshll.u32 %s99_s11, 4  ;;  %25 = vst [vmem:[#allocation5] sm:$0xff] %v23_v0  ;;  %s33_s12 = int_to_ptr.vmem [resolvable:$true] %s32_s12 }
   0x7   :  { %26 = vst [vmem:[#allocation5 + $0x8] sm:$0xff] %v24_v1 }
   0x8   :  { %37 = dma.vmem_to_hbm [thread:$0]  %s33_s12, 256, %s35_s15, [#allocation4]  }
   0x9   :  { %96 = dma.done.wait [#allocation4], 256  }
   0xa   :  { %97 = vsyncadd [#allocation4], 4294967040 }
   0xb   :  { %42 = vsyncpa [#allocation3], 1 }
   0xc   :  { %43 = vsyncpa [#allocation4], 1 }

</bundles_post_ra>
